<compile_context>
chip_gen: v7x
topology: tpu7x:2x2x1
jax: 0.10.0
libtpu: 0.0.40
codegen_flags: <defaults>
</compile_context>

<pallas_src>
import functools
import math

import jax
import jax.numpy as jnp
from jax.experimental import pallas as pl
from jax.experimental.pallas import tpu as pltpu

_TARGET_TILE_BYTES = 2 * 1024 * 1024  # ~2 MiB input tile -> near HBM roofline,
                                      # safe under every generation's VMEM.


# ---------------------------------------------------------------------------
# Kernels
# ---------------------------------------------------------------------------
def _packed_mean_kernel(x_ref, o_ref, *, w: int, groups: int):
    """Lane-dense fast path for small W.

    x_ref: (TS, groups * w)  -- `groups` original rows folded into the lane dim
    o_ref: (TS, groups)      -- o[s, g] = mean(x[s, g*w:(g+1)*w])
    """
    x = x_ref[...].astype(jnp.float32)  # f32 accumulation
    parts = [
        jnp.sum(x[:, g * w:(g + 1) * w], axis=-1, keepdims=True)
        for g in range(groups)
    ]
    sums = jnp.concatenate(parts, axis=-1)  # (TS, groups)
    o_ref[...] = (sums * (1.0 / w)).astype(o_ref.dtype)


def _simple_mean_kernel(x_ref, o_ref, *, w: int):
    """Generic row-tiled path: reduce the full last dim in one block."""
    x = x_ref[...].astype(jnp.float32)
    o_ref[...] = (jnp.sum(x, axis=-1, keepdims=True) * (1.0 / w)).astype(o_ref.dtype)


def _wtiled_mean_kernel(x_ref, o_ref, acc_ref, *, w: int):
    """Large-W path: accumulate over a (last, 'arbitrary') reduction grid axis."""
    k = pl.program_id(1)

    @pl.when(k == 0)
    def _init():
        acc_ref[...] = jnp.zeros_like(acc_ref)

    acc_ref[...] += jnp.sum(x_ref[...].astype(jnp.float32), axis=-1, keepdims=True)

    @pl.when(k == pl.num_programs(1) - 1)
    def _finalize():
        o_ref[...] = (acc_ref[...] * (1.0 / w)).astype(o_ref.dtype)


# ---------------------------------------------------------------------------
# Wrapper paths
# ---------------------------------------------------------------------------
def _packed_path(x2d, rows, w, out_dtype):
    """Fold rows into lanes so the kernel last dim is a multiple of 128."""
    lane = None
    for cand in (512, 256, 128):  # prefer wider slabs -> denser output stores
        g = cand // w
        if cand % w == 0 and rows % g == 0:
            lane = cand
            break
    if lane is None:
        return None
    groups = lane // w
    s = rows // groups
    xp = x2d.reshape(s, lane)  # contiguous (free) reshape in HBM

    itemsize = jnp.dtype(x2d.dtype).itemsize
    tile_s = max(8, _TARGET_TILE_BYTES // (lane * itemsize))
    tile_s = (tile_s // 8) * 8
    if tile_s >= s:
        tile_s = s
    num_blocks = pl.cdiv(s, tile_s)

    out = pl.pallas_call(
        functools.partial(_packed_mean_kernel, w=w, groups=groups),
        out_shape=jax.ShapeDtypeStruct((s, groups), out_dtype),
        grid=(num_blocks,),
        in_specs=[pl.BlockSpec((tile_s, lane), lambda i: (i, 0))],
        out_specs=pl.BlockSpec((tile_s, groups), lambda i: (i, 0)),
        compiler_params=pltpu.CompilerParams(dimension_semantics=("parallel",)),
    )(xp)
    return out.reshape(rows)


def _wtiled_path(x2d, rows, w, out_dtype):
    """Tile both rows and the (huge, 128-divisible) reduction dim."""
    tile_w = 0
    for cand in range(2048, 0, -128):
        if w % cand == 0:
            tile_w = cand
            break
    if tile_w == 0:
        return None
    itemsize = jnp.dtype(x2d.dtype).itemsize
    tile_r = max(8, _TARGET_TILE_BYTES // (tile_w * itemsize))
    tile_r = (tile_r // 8) * 8
    if tile_r >= rows:
        tile_r = rows

    out = pl.pallas_call(
        functools.partial(_wtiled_mean_kernel, w=w),
        out_shape=jax.ShapeDtypeStruct((rows, 1), out_dtype),
        grid=(pl.cdiv(rows, tile_r), w // tile_w),
        in_specs=[pl.BlockSpec((tile_r, tile_w), lambda i, k: (i, k))],
        out_specs=pl.BlockSpec((tile_r, 1), lambda i, k: (i, 0)),
        scratch_shapes=[pltpu.VMEM((tile_r, 1), jnp.float32)],
        compiler_params=pltpu.CompilerParams(
            dimension_semantics=("parallel", "arbitrary")),
    )(x2d)
    return out.reshape(rows)


def _simple_path(x2d, rows, w, out_dtype):
    """Generic row-tiled path (full W per block)."""
    itemsize = jnp.dtype(x2d.dtype).itemsize
    tile_r = max(8, _TARGET_TILE_BYTES // max(1, w * itemsize))
    tile_r = (tile_r // 8) * 8
    if tile_r >= rows:
        tile_r = rows
    num_blocks = pl.cdiv(rows, tile_r)

    out = pl.pallas_call(
        functools.partial(_simple_mean_kernel, w=w),
        out_shape=jax.ShapeDtypeStruct((rows, 1), out_dtype),
        grid=(num_blocks,),
        in_specs=[pl.BlockSpec((tile_r, w), lambda i: (i, 0))],
        out_specs=pl.BlockSpec((tile_r, 1), lambda i: (i, 0)),
        compiler_params=pltpu.CompilerParams(dimension_semantics=("parallel",)),
    )(x2d)
    return out.reshape(rows)


def global_avg_pool(x):
    """Mean over the last axis of x (any rank >= 1), matching torch x.mean(-1)."""
    orig_shape = x.shape
    w = orig_shape[-1]
    lead = orig_shape[:-1]
    rows = math.prod(lead) if lead else 1

    if rows == 0 or w == 0:
        return jnp.mean(x, axis=-1)  # degenerate shapes: defer to XLA semantics

    x2d = x.reshape(rows, w)
    out_dtype = x.dtype

    out = None
    if 8 <= w < 128 and 128 % w == 0:
        out = _packed_path(x2d, rows, w, out_dtype)          # lane-dense fold
    if out is None and w > 4096 and w % 128 == 0:
        out = _wtiled_path(x2d, rows, w, out_dtype)          # tiled reduction
    if out is None:
        out = _simple_path(x2d, rows, w, out_dtype)          # generic fallback

    return out.reshape(lead)


if __name__ == "__main__":
    key = jax.random.PRNGKey(0)

    # Primary NCHW-like input implied by the module's usage.
    x = jax.random.normal(key, (2, 4, 16, 16), dtype=jnp.float32)
    y = global_avg_pool(x)
    jax.block_until_ready(y)
    ref = jnp.mean(x, axis=-1)
    assert y.shape == ref.shape, (y.shape, ref.shape)
    assert jnp.allclose(y, ref, atol=1e-5, rtol=1e-5)

    # Generic path (W not a divisor of 128).
    x2 = jax.random.normal(jax.random.PRNGKey(0), (3, 5, 20), dtype=jnp.float32)
    y2 = global_avg_pool(x2)
    jax.block_until_ready(y2)
    assert jnp.allclose(y2, jnp.mean(x2, axis=-1), atol=1e-5, rtol=1e-5)

    # bf16 input: verifies f32 accumulation + cast-on-store.
    x3 = jax.random.normal(key, (2, 4, 16, 16), dtype=jnp.bfloat16)
    y3 = global_avg_pool(x3)
    jax.block_until_ready(y3)
    ref3 = jnp.mean(x3.astype(jnp.float32), axis=-1)
    assert jnp.allclose(y3.astype(jnp.float32), ref3, atol=2e-2, rtol=2e-2)

    print("KERNEL_OK")
</pallas_src>

<mosaic_0001>
module attributes {stable_mosaic.version = 11 : i64} {
  func.func @_packed_mean_kernel(%arg0: i32, %arg1: memref<4x512xf32, #tpu.memory_space<vmem>>, %arg2: memref<4x32xf32, #tpu.memory_space<vmem>>) attributes {dimension_semantics = [#tpu.dimension_semantics<parallel>], iteration_bounds = array<i64: 1>, scalar_prefetch = 0 : i64, scratch_operands = 0 : i64, tpu.core_type = #tpu.core_type<tc>, window_params = [{transform_indices = @transform_0, window_bounds = array<i64: 4, 512>}, {transform_indices = @transform_1, window_bounds = array<i64: 4, 32>}]} {
    %c0 = arith.constant 0 : index
    %c0_0 = arith.constant 0 : index
    %0 = vector.load %arg1[%c0, %c0_0] : memref<4x512xf32, #tpu.memory_space<vmem>>, vector<4x512xf32>
    %1 = vector.extract_strided_slice %0 {offsets = [0, 0], sizes = [4, 16], strides = [1, 1]} : vector<4x512xf32> to vector<4x16xf32>
    %cst = arith.constant dense<0.000000e+00> : vector<4xf32>
    %2 = vector.multi_reduction <add>, %1, %cst [1] : vector<4x16xf32> to vector<4xf32>
    %3 = vector.shape_cast %2 : vector<4xf32> to vector<4x1xf32>
    %4 = vector.extract_strided_slice %0 {offsets = [0, 16], sizes = [4, 16], strides = [1, 1]} : vector<4x512xf32> to vector<4x16xf32>
    %cst_1 = arith.constant dense<0.000000e+00> : vector<4xf32>
    %5 = vector.multi_reduction <add>, %4, %cst_1 [1] : vector<4x16xf32> to vector<4xf32>
    %6 = vector.shape_cast %5 : vector<4xf32> to vector<4x1xf32>
    %7 = vector.extract_strided_slice %0 {offsets = [0, 32], sizes = [4, 16], strides = [1, 1]} : vector<4x512xf32> to vector<4x16xf32>
    %cst_2 = arith.constant dense<0.000000e+00> : vector<4xf32>
    %8 = vector.multi_reduction <add>, %7, %cst_2 [1] : vector<4x16xf32> to vector<4xf32>
    %9 = vector.shape_cast %8 : vector<4xf32> to vector<4x1xf32>
    %10 = vector.extract_strided_slice %0 {offsets = [0, 48], sizes = [4, 16], strides = [1, 1]} : vector<4x512xf32> to vector<4x16xf32>
    %cst_3 = arith.constant dense<0.000000e+00> : vector<4xf32>
    %11 = vector.multi_reduction <add>, %10, %cst_3 [1] : vector<4x16xf32> to vector<4xf32>
    %12 = vector.shape_cast %11 : vector<4xf32> to vector<4x1xf32>
    %13 = vector.extract_strided_slice %0 {offsets = [0, 64], sizes = [4, 16], strides = [1, 1]} : vector<4x512xf32> to vector<4x16xf32>
    %cst_4 = arith.constant dense<0.000000e+00> : vector<4xf32>
    %14 = vector.multi_reduction <add>, %13, %cst_4 [1] : vector<4x16xf32> to vector<4xf32>
    %15 = vector.shape_cast %14 : vector<4xf32> to vector<4x1xf32>
    %16 = vector.extract_strided_slice %0 {offsets = [0, 80], sizes = [4, 16], strides = [1, 1]} : vector<4x512xf32> to vector<4x16xf32>
    %cst_5 = arith.constant dense<0.000000e+00> : vector<4xf32>
    %17 = vector.multi_reduction <add>, %16, %cst_5 [1] : vector<4x16xf32> to vector<4xf32>
    %18 = vector.shape_cast %17 : vector<4xf32> to vector<4x1xf32>
    %19 = vector.extract_strided_slice %0 {offsets = [0, 96], sizes = [4, 16], strides = [1, 1]} : vector<4x512xf32> to vector<4x16xf32>
    %cst_6 = arith.constant dense<0.000000e+00> : vector<4xf32>
    %20 = vector.multi_reduction <add>, %19, %cst_6 [1] : vector<4x16xf32> to vector<4xf32>
    %21 = vector.shape_cast %20 : vector<4xf32> to vector<4x1xf32>
    %22 = vector.extract_strided_slice %0 {offsets = [0, 112], sizes = [4, 16], strides = [1, 1]} : vector<4x512xf32> to vector<4x16xf32>
    %cst_7 = arith.constant dense<0.000000e+00> : vector<4xf32>
    %23 = vector.multi_reduction <add>, %22, %cst_7 [1] : vector<4x16xf32> to vector<4xf32>
    %24 = vector.shape_cast %23 : vector<4xf32> to vector<4x1xf32>
    %25 = vector.extract_strided_slice %0 {offsets = [0, 128], sizes = [4, 16], strides = [1, 1]} : vector<4x512xf32> to vector<4x16xf32>
    %cst_8 = arith.constant dense<0.000000e+00> : vector<4xf32>
    %26 = vector.multi_reduction <add>, %25, %cst_8 [1] : vector<4x16xf32> to vector<4xf32>
    %27 = vector.shape_cast %26 : vector<4xf32> to vector<4x1xf32>
    %28 = vector.extract_strided_slice %0 {offsets = [0, 144], sizes = [4, 16], strides = [1, 1]} : vector<4x512xf32> to vector<4x16xf32>
    %cst_9 = arith.constant dense<0.000000e+00> : vector<4xf32>
    %29 = vector.multi_reduction <add>, %28, %cst_9 [1] : vector<4x16xf32> to vector<4xf32>
    %30 = vector.shape_cast %29 : vector<4xf32> to vector<4x1xf32>
    %31 = vector.extract_strided_slice %0 {offsets = [0, 160], sizes = [4, 16], strides = [1, 1]} : vector<4x512xf32> to vector<4x16xf32>
    %cst_10 = arith.constant dense<0.000000e+00> : vector<4xf32>
    %32 = vector.multi_reduction <add>, %31, %cst_10 [1] : vector<4x16xf32> to vector<4xf32>
    %33 = vector.shape_cast %32 : vector<4xf32> to vector<4x1xf32>
    %34 = vector.extract_strided_slice %0 {offsets = [0, 176], sizes = [4, 16], strides = [1, 1]} : vector<4x512xf32> to vector<4x16xf32>
    %cst_11 = arith.constant dense<0.000000e+00> : vector<4xf32>
    %35 = vector.multi_reduction <add>, %34, %cst_11 [1] : vector<4x16xf32> to vector<4xf32>
    %36 = vector.shape_cast %35 : vector<4xf32> to vector<4x1xf32>
    %37 = vector.extract_strided_slice %0 {offsets = [0, 192], sizes = [4, 16], strides = [1, 1]} : vector<4x512xf32> to vector<4x16xf32>
    %cst_12 = arith.constant dense<0.000000e+00> : vector<4xf32>
    %38 = vector.multi_reduction <add>, %37, %cst_12 [1] : vector<4x16xf32> to vector<4xf32>
    %39 = vector.shape_cast %38 : vector<4xf32> to vector<4x1xf32>
    %40 = vector.extract_strided_slice %0 {offsets = [0, 208], sizes = [4, 16], strides = [1, 1]} : vector<4x512xf32> to vector<4x16xf32>
    %cst_13 = arith.constant dense<0.000000e+00> : vector<4xf32>
    %41 = vector.multi_reduction <add>, %40, %cst_13 [1] : vector<4x16xf32> to vector<4xf32>
    %42 = vector.shape_cast %41 : vector<4xf32> to vector<4x1xf32>
    %43 = vector.extract_strided_slice %0 {offsets = [0, 224], sizes = [4, 16], strides = [1, 1]} : vector<4x512xf32> to vector<4x16xf32>
    %cst_14 = arith.constant dense<0.000000e+00> : vector<4xf32>
    %44 = vector.multi_reduction <add>, %43, %cst_14 [1] : vector<4x16xf32> to vector<4xf32>
    %45 = vector.shape_cast %44 : vector<4xf32> to vector<4x1xf32>
    %46 = vector.extract_strided_slice %0 {offsets = [0, 240], sizes = [4, 16], strides = [1, 1]} : vector<4x512xf32> to vector<4x16xf32>
    %cst_15 = arith.constant dense<0.000000e+00> : vector<4xf32>
    %47 = vector.multi_reduction <add>, %46, %cst_15 [1] : vector<4x16xf32> to vector<4xf32>
    %48 = vector.shape_cast %47 : vector<4xf32> to vector<4x1xf32>
    %49 = vector.extract_strided_slice %0 {offsets = [0, 256], sizes = [4, 16], strides = [1, 1]} : vector<4x512xf32> to vector<4x16xf32>
    %cst_16 = arith.constant dense<0.000000e+00> : vector<4xf32>
    %50 = vector.multi_reduction <add>, %49, %cst_16 [1] : vector<4x16xf32> to vector<4xf32>
    %51 = vector.shape_cast %50 : vector<4xf32> to vector<4x1xf32>
    %52 = vector.extract_strided_slice %0 {offsets = [0, 272], sizes = [4, 16], strides = [1, 1]} : vector<4x512xf32> to vector<4x16xf32>
    %cst_17 = arith.constant dense<0.000000e+00> : vector<4xf32>
    %53 = vector.multi_reduction <add>, %52, %cst_17 [1] : vector<4x16xf32> to vector<4xf32>
    %54 = vector.shape_cast %53 : vector<4xf32> to vector<4x1xf32>
    %55 = vector.extract_strided_slice %0 {offsets = [0, 288], sizes = [4, 16], strides = [1, 1]} : vector<4x512xf32> to vector<4x16xf32>
    %cst_18 = arith.constant dense<0.000000e+00> : vector<4xf32>
    %56 = vector.multi_reduction <add>, %55, %cst_18 [1] : vector<4x16xf32> to vector<4xf32>
    %57 = vector.shape_cast %56 : vector<4xf32> to vector<4x1xf32>
    %58 = vector.extract_strided_slice %0 {offsets = [0, 304], sizes = [4, 16], strides = [1, 1]} : vector<4x512xf32> to vector<4x16xf32>
    %cst_19 = arith.constant dense<0.000000e+00> : vector<4xf32>
    %59 = vector.multi_reduction <add>, %58, %cst_19 [1] : vector<4x16xf32> to vector<4xf32>
    %60 = vector.shape_cast %59 : vector<4xf32> to vector<4x1xf32>
    %61 = vector.extract_strided_slice %0 {offsets = [0, 320], sizes = [4, 16], strides = [1, 1]} : vector<4x512xf32> to vector<4x16xf32>
    %cst_20 = arith.constant dense<0.000000e+00> : vector<4xf32>
    %62 = vector.multi_reduction <add>, %61, %cst_20 [1] : vector<4x16xf32> to vector<4xf32>
    %63 = vector.shape_cast %62 : vector<4xf32> to vector<4x1xf32>
    %64 = vector.extract_strided_slice %0 {offsets = [0, 336], sizes = [4, 16], strides = [1, 1]} : vector<4x512xf32> to vector<4x16xf32>
    %cst_21 = arith.constant dense<0.000000e+00> : vector<4xf32>
    %65 = vector.multi_reduction <add>, %64, %cst_21 [1] : vector<4x16xf32> to vector<4xf32>
    %66 = vector.shape_cast %65 : vector<4xf32> to vector<4x1xf32>
    %67 = vector.extract_strided_slice %0 {offsets = [0, 352], sizes = [4, 16], strides = [1, 1]} : vector<4x512xf32> to vector<4x16xf32>
    %cst_22 = arith.constant dense<0.000000e+00> : vector<4xf32>
    %68 = vector.multi_reduction <add>, %67, %cst_22 [1] : vector<4x16xf32> to vector<4xf32>
    %69 = vector.shape_cast %68 : vector<4xf32> to vector<4x1xf32>
    %70 = vector.extract_strided_slice %0 {offsets = [0, 368], sizes = [4, 16], strides = [1, 1]} : vector<4x512xf32> to vector<4x16xf32>
    %cst_23 = arith.constant dense<0.000000e+00> : vector<4xf32>
    %71 = vector.multi_reduction <add>, %70, %cst_23 [1] : vector<4x16xf32> to vector<4xf32>
    %72 = vector.shape_cast %71 : vector<4xf32> to vector<4x1xf32>
    %73 = vector.extract_strided_slice %0 {offsets = [0, 384], sizes = [4, 16], strides = [1, 1]} : vector<4x512xf32> to vector<4x16xf32>
    %cst_24 = arith.constant dense<0.000000e+00> : vector<4xf32>
    %74 = vector.multi_reduction <add>, %73, %cst_24 [1] : vector<4x16xf32> to vector<4xf32>
    %75 = vector.shape_cast %74 : vector<4xf32> to vector<4x1xf32>
    %76 = vector.extract_strided_slice %0 {offsets = [0, 400], sizes = [4, 16], strides = [1, 1]} : vector<4x512xf32> to vector<4x16xf32>
    %cst_25 = arith.constant dense<0.000000e+00> : vector<4xf32>
    %77 = vector.multi_reduction <add>, %76, %cst_25 [1] : vector<4x16xf32> to vector<4xf32>
    %78 = vector.shape_cast %77 : vector<4xf32> to vector<4x1xf32>
    %79 = vector.extract_strided_slice %0 {offsets = [0, 416], sizes = [4, 16], strides = [1, 1]} : vector<4x512xf32> to vector<4x16xf32>
    %cst_26 = arith.constant dense<0.000000e+00> : vector<4xf32>
    %80 = vector.multi_reduction <add>, %79, %cst_26 [1] : vector<4x16xf32> to vector<4xf32>
    %81 = vector.shape_cast %80 : vector<4xf32> to vector<4x1xf32>
    %82 = vector.extract_strided_slice %0 {offsets = [0, 432], sizes = [4, 16], strides = [1, 1]} : vector<4x512xf32> to vector<4x16xf32>
    %cst_27 = arith.constant dense<0.000000e+00> : vector<4xf32>
    %83 = vector.multi_reduction <add>, %82, %cst_27 [1] : vector<4x16xf32> to vector<4xf32>
    %84 = vector.shape_cast %83 : vector<4xf32> to vector<4x1xf32>
    %85 = vector.extract_strided_slice %0 {offsets = [0, 448], sizes = [4, 16], strides = [1, 1]} : vector<4x512xf32> to vector<4x16xf32>
    %cst_28 = arith.constant dense<0.000000e+00> : vector<4xf32>
    %86 = vector.multi_reduction <add>, %85, %cst_28 [1] : vector<4x16xf32> to vector<4xf32>
    %87 = vector.shape_cast %86 : vector<4xf32> to vector<4x1xf32>
    %88 = vector.extract_strided_slice %0 {offsets = [0, 464], sizes = [4, 16], strides = [1, 1]} : vector<4x512xf32> to vector<4x16xf32>
    %cst_29 = arith.constant dense<0.000000e+00> : vector<4xf32>
    %89 = vector.multi_reduction <add>, %88, %cst_29 [1] : vector<4x16xf32> to vector<4xf32>
    %90 = vector.shape_cast %89 : vector<4xf32> to vector<4x1xf32>
    %91 = vector.extract_strided_slice %0 {offsets = [0, 480], sizes = [4, 16], strides = [1, 1]} : vector<4x512xf32> to vector<4x16xf32>
    %cst_30 = arith.constant dense<0.000000e+00> : vector<4xf32>
    %92 = vector.multi_reduction <add>, %91, %cst_30 [1] : vector<4x16xf32> to vector<4xf32>
    %93 = vector.shape_cast %92 : vector<4xf32> to vector<4x1xf32>
    %94 = vector.extract_strided_slice %0 {offsets = [0, 496], sizes = [4, 16], strides = [1, 1]} : vector<4x512xf32> to vector<4x16xf32>
    %cst_31 = arith.constant dense<0.000000e+00> : vector<4xf32>
    %95 = vector.multi_reduction <add>, %94, %cst_31 [1] : vector<4x16xf32> to vector<4xf32>
    %96 = vector.shape_cast %95 : vector<4xf32> to vector<4x1xf32>
    %97 = tpu.concatenate %3, %6, %9, %12, %15, %18, %21, %24, %27, %30, %33, %36, %39, %42, %45, %48 in 1 : vector<4x1xf32>, vector<4x1xf32>, vector<4x1xf32>, vector<4x1xf32>, vector<4x1xf32>, vector<4x1xf32>, vector<4x1xf32>, vector<4x1xf32>, vector<4x1xf32>, vector<4x1xf32>, vector<4x1xf32>, vector<4x1xf32>, vector<4x1xf32>, vector<4x1xf32>, vector<4x1xf32>, vector<4x1xf32> -> vector<4x16xf32>
    %98 = tpu.concatenate %51, %54, %57, %60, %63, %66, %69, %72, %75, %78, %81, %84, %87, %90, %93, %96 in 1 : vector<4x1xf32>, vector<4x1xf32>, vector<4x1xf32>, vector<4x1xf32>, vector<4x1xf32>, vector<4x1xf32>, vector<4x1xf32>, vector<4x1xf32>, vector<4x1xf32>, vector<4x1xf32>, vector<4x1xf32>, vector<4x1xf32>, vector<4x1xf32>, vector<4x1xf32>, vector<4x1xf32>, vector<4x1xf32> -> vector<4x16xf32>
    %99 = tpu.concatenate %97, %98 in 1 : vector<4x16xf32>, vector<4x16xf32> -> vector<4x32xf32>
    %cst_32 = arith.constant 6.250000e-02 : f32
    %100 = vector.broadcast %cst_32 : f32 to vector<4x32xf32>
    %101 = arith.mulf %99, %100 : vector<4x32xf32>
    %c0_33 = arith.constant 0 : index
    %c0_34 = arith.constant 0 : index
    %102 = vector.load %arg2[%c0_33, %c0_34] : memref<4x32xf32, #tpu.memory_space<vmem>>, vector<4x32xf32>
    tpu.vector_store %arg2[%c0_33, %c0_34], %101 {strides = array<i32>} : memref<4x32xf32, #tpu.memory_space<vmem>>, vector<4x32xf32>,
    return
  }
  func.func @transform_0(%arg0: i32) -> (i32, i32) {
    %c0_i32 = arith.constant 0 : i32
    %c0_i32_0 = arith.constant 0 : i32
    return %arg0, %c0_i32 : i32, i32
  }
  func.func @transform_1(%arg0: i32) -> (i32, i32) {
    %c0_i32 = arith.constant 0 : i32
    %c0_i32_0 = arith.constant 0 : i32
    return %arg0, %c0_i32 : i32, i32
  }
}

</mosaic_0001>

<bundles_post_ra>
// kernel: tpu_custom_call.1
= control target key start
LH: loop header
LB: loop body
LE: loop exit
PB: predicated region body
PF: predicated region fallthrough
CT: control target
= control target key end

     0   :  { %6 = vsyncpa [#allocation3], 0  ;;  %s487_s0 = inlined_call_operand.hbm [shape: f32[4,512], index: 0, kind: input, shape index: {}]   ;;  %s488_s1 = inlined_call_operand.hbm [shape: f32[4,32], index: 1, kind: output, shape index: {}]  }
   0x1   :  { %7 = vsyncpa [#allocation4], 0  ;;  %s338_s6 = smov [#allocation2]   ;;  %s290_s10 = scalar_lea.hbm %s487_s0, 256 }
   0x2   :  { %s14_s7 = sshll.u32 %s338_s6, 4  ;;  %p291_p0 = scmp.ne.s32.totalorder %s487_s0, %s290_s10  ;;  %s15_s7 = int_to_ptr.vmem [resolvable:$true] %s14_s7 }
   0x3   :  { %p294_p1 = scmp.lt.u32.totalorder %s290_s10, %s487_s0 }
   0x5   :  { %p296_p2 = pnand %p294_p1, %p291_p0 }
   0x7   :  { %299 = shalt.err (!%p296_p2)
}
   0x8   :  { %s300_s15 = scalar_lea.vmem %s15_s7, 256  ;;  %p305_p4 = scmp.lt.s32.totalorder %s15_s7, %s15_s7 }
   0x9   :  { %p301_p3 = scmp.ne.s32.totalorder %s15_s7, %s300_s15  ;;  %p306_p5 = scmp.lt.s32.totalorder %s300_s15, %s300_s15 }
   0xb   :  { %p307_p6 = por %p306_p5, %p305_p4 }
   0xd   :  { %p308_p7 = pnand %p307_p6, %p301_p3 }
   0xf   :  { %311 = shalt.err (!%p308_p7)
}
  0x10   :  { %17 = dma.hbm_to_vmem [thread:$0]  %s487_s0, 256, %s15_s7, [#allocation3]  }
  0x11   :  { %334 = dma.done.wait [#allocation3], 256  }
  0x12   :  { %335 = vsyncadd [#allocation3], 4294967040  ;;  %vm23_vm0 = vcmask 125952   ;;  %v21_v0 = vld [vmem:[#allocation2] sm:$0xff]  ;;  %s339_s18 = smov 96   ;;  %s340_s19 = smov 64  }
  0x13   :  { %v24_v1 = vsel %vm23_vm0, %v21_v0, 0.0  ;;  %34 = vrot.lane.b32.xlu1 %v21_v0, %s339_s18  ;;  %s341_s20 = smov 16   ;;  %s342_s21 = smov 112   ;;  %v70_v17 = vcombine.high %v21_v0, %v21_v0  ;;  %v392_v19 = vld [vmem:[#allocation2 + $0x8] sm:$0xff]  ;;  %vm210_vm1 = vcmask 7168   ;;  %vm212_vm2 = vcmask 15360  }
  0x14   :  { %25 = vadd.xlane.f32.xlu0 %v24_v1  ;;  %s343_s0 = smov 80   ;;  %s344_s22 = smov 48   ;;  %v117_v20 = vsel %vm23_vm0, %v392_v19, 0.0  ;;  %vm214_vm3 = vcmask 23552   ;;  %vm216_vm4 = vcmask 31744   ;;  %vm218_vm5 = vcmask 39936  }
  0x15   :  { %s345_s23 = smov 32   ;;  %v72_v18 = vsel %vm23_vm0, %v70_v17, 0.0  ;;  %vm220_vm6 = vcmask 48128   ;;  %vm222_vm7 = vcmask 56320   ;;  %vm224_vm8 = vcmask 64512   ;;  %s346_s24 = smov [#allocation5]  }
  0x16   :  { %vm226_vm9 = vcmask 72704   ;;  %vm228_vm10 = vcmask 80896   ;;  %vm230_vm11 = vcmask 89088   ;;  %vm232_vm12 = vcmask 97280   ;;  %s270_s25 = sshll.u32 %s346_s24, 4  ;;  %s271_s25 = int_to_ptr.vmem [resolvable:$true] %s270_s25 }
  0x17   :  { %46 = vrot.lane.b32.xlu1 %v21_v0, %s340_s19  ;;  %vm234_vm13 = vcmask 105472   ;;  %vm236_vm14 = vcmask 113664   ;;  %vm238_vm15 = vcmask 121856   ;;  %s312_s26 = scalar_lea.vmem %s271_s25, 64  ;;  %p317_p9 = scmp.lt.s32.totalorder %s271_s25, %s271_s25 }
  0x18   :  { %p313_p8 = scmp.ne.s32.totalorder %s271_s25, %s312_s26  ;;  %p318_p10 = scmp.lt.s32.totalorder %s312_s26, %s312_s26 }
  0x1a   :  { %p319_p11 = por %p318_p10, %p317_p9 }
  0x1b   :  { %64 = vrot.lane.b32.xlu1 %v21_v0, %s341_s20 }
  0x1c   :  { %p320_p12 = pnand %p319_p11, %p313_p8 }
  0x2a   :  { %28 = vrot.lane.b32.xlu0 %v21_v0, %s342_s21 }
  0x2e   :  { %40 = vrot.lane.b32.xlu0 %v21_v0, %s343_s0 }
  0x32   :  { %52 = vrot.lane.b32.xlu0 %v21_v0, %s344_s22 }
  0x36   :  { %58 = vrot.lane.b32.xlu0 %v21_v0, %s345_s23 }
  0x85   :  { %v35_v3 = vpop.permute.xlu1 %34 }
  0x86   :  { %v37_v6 = vsel %vm23_vm0, %v35_v3, 0.0 }
  0x89   :  { %v47_v8 = vpop.permute.xlu1 %46 }
  0x8a   :  { %v49_v10 = vsel %vm23_vm0, %v47_v8, 0.0 }
  0x8d   :  { %v65_v14 = vpop.permute.xlu1 %64 }
  0x8e   :  { %v67_v16 = vsel %vm23_vm0, %v65_v14, 0.0 }
  0xa1   :  { %v26_v2 = vpop.xlane.xlu0 %25 }
  0xa5   :  { %v29_v4 = vpop.permute.xlu0 %28 }
  0xa6   :  { %v31_v5 = vsel %vm23_vm0, %v29_v4, 0.0 }
  0xa7   :  { %32 = vadd.xlane.f32.xlu1 %v31_v5 }
  0xa9   :  { %v41_v7 = vpop.permute.xlu0 %40 }
  0xaa   :  { %v43_v9 = vsel %vm23_vm0, %v41_v7, 0.0 }
  0xab   :  { %38 = vadd.xlane.f32.xlu1 %v37_v6  ;;  %44 = vadd.xlane.f32.xlu0 %v43_v9 }
  0xad   :  { %v53_v11 = vpop.permute.xlu0 %52 }
  0xae   :  { %v55_v12 = vsel %vm23_vm0, %v53_v11, 0.0 }
  0xaf   :  { %50 = vadd.xlane.f32.xlu0 %v49_v10  ;;  %56 = vadd.xlane.f32.xlu1 %v55_v12 }
  0xb1   :  { %v59_v13 = vpop.permute.xlu0 %58 }
  0xb2   :  { %v61_v15 = vsel %vm23_vm0, %v59_v13, 0.0  ;;  %v163_v13 = vcombine.high %v392_v19, %v392_v19 }
  0xb3   :  { %62 = vadd.xlane.f32.xlu0 %v61_v15 }
  0xb7   :  { %68 = vadd.xlane.f32.xlu0 %v67_v16  ;;  %v165_v16 = vsel %vm23_vm0, %v163_v13, 0.0 }
  0xbb   :  { %73 = vadd.xlane.f32.xlu0 %v72_v18 }
  0xc0   :  { %75 = vrot.lane.b32.xlu1 %v70_v17, %s342_s21 }
  0xc4   :  { %81 = vrot.lane.b32.xlu1 %v70_v17, %s339_s18 }
  0xc8   :  { %87 = vrot.lane.b32.xlu1 %v70_v17, %s343_s0 }
  0xcc   :  { %93 = vrot.lane.b32.xlu1 %v70_v17, %s340_s19 }
  0xd0   :  { %99 = vrot.lane.b32.xlu1 %v70_v17, %s344_s22 }
  0xd4   :  { %105 = vrot.lane.b32.xlu1 %v70_v17, %s345_s23 }
  0xd8   :  { %111 = vrot.lane.b32.xlu1 %v70_v17, %s341_s20 }
  0xfc   :  { %118 = vadd.xlane.f32.xlu1 %v117_v20 }
 0x10d   :  { %127 = vrot.lane.b32.xlu1 %v392_v19, %s339_s18 }
 0x134   :  { %v33_v21 = vpop.xlane.xlu1 %32 }
 0x135   :  { %v211_v22 = vsel %vm210_vm1, %v26_v2, %v33_v21 }
 0x138   :  { %v39_v23 = vpop.xlane.xlu1 %38  ;;  %v45_v24 = vpop.xlane.xlu0 %44 }
 0x139   :  { %v213_v25 = vsel %vm212_vm2, %v211_v22, %v39_v23 }
 0x13a   :  { %v215_v26 = vsel %vm214_vm3, %v213_v25, %v45_v24 }
 0x13c   :  { %v57_v27 = vpop.xlane.xlu1 %56  ;;  %v51_v28 = vpop.xlane.xlu0 %50 }
 0x13d   :  { %v217_v29 = vsel %vm216_vm4, %v215_v26, %v51_v28 }
 0x13e   :  { %v219_v30 = vsel %vm218_vm5, %v217_v29, %v57_v27 }
 0x140   :  { %v76_v31 = vpop.permute.xlu1 %75  ;;  %v63_v32 = vpop.xlane.xlu0 %62 }
 0x141   :  { %v221_v33 = vsel %vm220_vm6, %v219_v30, %v63_v32  ;;  %v78_v34 = vsel %vm23_vm0, %v76_v31, 0.0 }
 0x142   :  { %79 = vadd.xlane.f32.xlu0 %v78_v34 }
 0x144   :  { %v82_v35 = vpop.permute.xlu1 %81  ;;  %v69_v36 = vpop.xlane.xlu0 %68 }
 0x145   :  { %v223_v37 = vsel %vm222_vm7, %v221_v33, %v69_v36  ;;  %v84_v38 = vsel %vm23_vm0, %v82_v35, 0.0 }
 0x146   :  { %85 = vadd.xlane.f32.xlu0 %v84_v38 }
 0x148   :  { %v88_v39 = vpop.permute.xlu1 %87  ;;  %v74_v52 = vpop.xlane.xlu0 %73 }
 0x149   :  { %v90_v40 = vsel %vm23_vm0, %v88_v39, 0.0  ;;  %v225_v53 = vsel %vm224_vm8, %v223_v37, %v74_v52 }
 0x14a   :  { %91 = vadd.xlane.f32.xlu0 %v90_v40 }
 0x14c   :  { %v94_v41 = vpop.permute.xlu1 %93 }
 0x14d   :  { %v96_v42 = vsel %vm23_vm0, %v94_v41, 0.0 }
 0x14e   :  { %97 = vadd.xlane.f32.xlu0 %v96_v42 }
 0x150   :  { %v100_v43 = vpop.permute.xlu1 %99 }
 0x151   :  { %v102_v44 = vsel %vm23_vm0, %v100_v43, 0.0 }
 0x152   :  { %103 = vadd.xlane.f32.xlu0 %v102_v44 }
 0x154   :  { %v106_v45 = vpop.permute.xlu1 %105 }
 0x155   :  { %v108_v46 = vsel %vm23_vm0, %v106_v45, 0.0 }
 0x156   :  { %109 = vadd.xlane.f32.xlu0 %v108_v46 }
 0x158   :  { %v112_v47 = vpop.permute.xlu1 %111 }
 0x159   :  { %v114_v48 = vsel %vm23_vm0, %v112_v47, 0.0 }
 0x15a   :  { %115 = vadd.xlane.f32.xlu0 %v114_v48 }
 0x170   :  { %121 = vrot.lane.b32.xlu0 %v392_v19, %s342_s21 }
 0x189   :  { %v119_v49 = vpop.xlane.xlu1 %118 }
 0x18d   :  { %v128_v50 = vpop.permute.xlu1 %127 }
 0x18e   :  { %v130_v51 = vsel %vm23_vm0, %v128_v50, 0.0 }
 0x18f   :  { %131 = vadd.xlane.f32.xlu1 %v130_v51 }
 0x1a0   :  { %139 = vrot.lane.b32.xlu1 %v392_v19, %s340_s19 }
 0x1cf   :  { %v80_v54 = vpop.xlane.xlu0 %79 }
 0x1d0   :  { %v227_v55 = vsel %vm226_vm9, %v225_v53, %v80_v54 }
 0x1d3   :  { %v86_v56 = vpop.xlane.xlu0 %85 }
 0x1d4   :  { %v229_v57 = vsel %vm228_vm10, %v227_v55, %v86_v56 }
 0x1d7   :  { %v92_v58 = vpop.xlane.xlu0 %91 }
 0x1d8   :  { %v231_v59 = vsel %vm230_vm11, %v229_v57, %v92_v58 }
 0x1db   :  { %v98_v60 = vpop.xlane.xlu0 %97 }
 0x1dc   :  { %v233_v61 = vsel %vm232_vm12, %v231_v59, %v98_v60 }
 0x1df   :  { %v104_v62 = vpop.xlane.xlu0 %103 }
 0x1e0   :  { %v235_v63 = vsel %vm234_vm13, %v233_v61, %v104_v62 }
 0x1e3   :  { %v110_v0 = vpop.xlane.xlu0 %109 }
 0x1e4   :  { %v237_v1 = vsel %vm236_vm14, %v235_v63, %v110_v0 }
 0x1e7   :  { %v116_v2 = vpop.xlane.xlu0 %115 }
 0x1e8   :  { %v425_v3 = vsel %vm238_vm15, %v237_v1, %v116_v2 }
 0x1eb   :  { %v122_v4 = vpop.permute.xlu0 %121 }
 0x1ec   :  { %v124_v5 = vsel %vm23_vm0, %v122_v4, 0.0 }
 0x1ed   :  { %125 = vadd.xlane.f32.xlu0 %v124_v5 }
 0x203   :  { %133 = vrot.lane.b32.xlu0 %v392_v19, %s343_s0 }
 0x21c   :  { %v132_v6 = vpop.xlane.xlu1 %131 }
 0x220   :  { %v140_v7 = vpop.permute.xlu1 %139 }
 0x221   :  { %v142_v8 = vsel %vm23_vm0, %v140_v7, 0.0 }
 0x222   :  { %143 = vadd.xlane.f32.xlu1 %v142_v8 }
 0x233   :  { %151 = vrot.lane.b32.xlu1 %v392_v19, %s345_s23 }
 0x27a   :  { %v126_v9 = vpop.xlane.xlu0 %125 }
 0x27b   :  { %v240_v17 = vsel %vm210_vm1, %v119_v49, %v126_v9  ;;  %vm262_vm1 = vcmask 257024  }
 0x27c   :  { %v241_v18 = vsel %vm212_vm2, %v240_v17, %v132_v6 }
 0x27e   :  { %v134_v10 = vpop.permute.xlu0 %133 }
 0x27f   :  { %v136_v11 = vsel %vm23_vm0, %v134_v10, 0.0 }
 0x280   :  { %137 = vadd.xlane.f32.xlu0 %v136_v11 }
 0x296   :  { %145 = vrot.lane.b32.xlu0 %v392_v19, %s344_s22 }
 0x2af   :  { %v144_v12 = vpop.xlane.xlu1 %143 }
 0x2b3   :  { %v152_v14 = vpop.permute.xlu1 %151 }
 0x2b4   :  { %v154_v15 = vsel %vm23_vm0, %v152_v14, 0.0 }
 0x2b5   :  { %155 = vadd.xlane.f32.xlu1 %v154_v15 }
 0x2b9   :  { %166 = vadd.xlane.f32.xlu1 %v165_v16 }
 0x2ca   :  { %168 = vrot.lane.b32.xlu1 %v163_v13, %s342_s21 }
 0x2ce   :  { %180 = vrot.lane.b32.xlu1 %v163_v13, %s343_s0 }
 0x2d2   :  { %186 = vrot.lane.b32.xlu1 %v163_v13, %s340_s19 }
 0x2d6   :  { %192 = vrot.lane.b32.xlu1 %v163_v13, %s344_s22 }
 0x2da   :  { %198 = vrot.lane.b32.xlu1 %v163_v13, %s345_s23 }
 0x2de   :  { %204 = vrot.lane.b32.xlu1 %v163_v13, %s341_s20 }
 0x30d   :  { %v138_v20 = vpop.xlane.xlu0 %137 }
 0x30e   :  { %v242_v21 = vsel %vm214_vm3, %v241_v18, %v138_v20 }
 0x30f   :  { %v243_v28 = vsel %vm216_vm4, %v242_v21, %v144_v12 }
 0x311   :  { %v146_v22 = vpop.permute.xlu0 %145 }
 0x312   :  { %v148_v23 = vsel %vm23_vm0, %v146_v22, 0.0 }
 0x313   :  { %149 = vadd.xlane.f32.xlu0 %v148_v23 }
 0x329   :  { %157 = vrot.lane.b32.xlu0 %v392_v19, %s341_s20 }
 0x342   :  { %v156_v24 = vpop.xlane.xlu1 %155 }
 0x346   :  { %v167_v25 = vpop.xlane.xlu1 %166 }
 0x34a   :  { %v169_v26 = vpop.permute.xlu1 %168 }
 0x34b   :  { %v171_v27 = vsel %vm23_vm0, %v169_v26, 0.0 }
 0x34c   :  { %172 = vadd.xlane.f32.xlu1 %v171_v27 }
 0x34e   :  { %v181_v33 = vpop.permute.xlu1 %180 }
 0x34f   :  { %v183_v44 = vsel %vm23_vm0, %v181_v33, 0.0 }
 0x352   :  { %v187_v34 = vpop.permute.xlu1 %186 }
 0x353   :  { %v189_v45 = vsel %vm23_vm0, %v187_v34, 0.0 }
 0x356   :  { %v193_v35 = vpop.permute.xlu1 %192 }
 0x357   :  { %v195_v19 = vsel %vm23_vm0, %v193_v35, 0.0 }
 0x358   :  { %196 = vadd.xlane.f32.xlu1 %v195_v19 }
 0x35a   :  { %v199_v36 = vpop.permute.xlu1 %198 }
 0x35b   :  { %v201_v46 = vsel %vm23_vm0, %v199_v36, 0.0 }
 0x35e   :  { %v205_v37 = vpop.permute.xlu1 %204 }
 0x35f   :  { %v207_v38 = vsel %vm23_vm0, %v205_v37, 0.0 }
 0x360   :  { %208 = vadd.xlane.f32.xlu1 %v207_v38 }
 0x3a0   :  { %v150_v29 = vpop.xlane.xlu0 %149 }
 0x3a1   :  { %v244_v30 = vsel %vm218_vm5, %v243_v28, %v150_v29 }
 0x3a2   :  { %v245_v39 = vsel %vm220_vm6, %v244_v30, %v156_v24 }
 0x3a4   :  { %v158_v31 = vpop.permute.xlu0 %157 }
 0x3a5   :  { %v160_v32 = vsel %vm23_vm0, %v158_v31, 0.0 }
 0x3a6   :  { %161 = vadd.xlane.f32.xlu0 %v160_v32 }
 0x3bc   :  { %174 = vrot.lane.b32.xlu0 %v163_v13, %s339_s18 }
 0x3d9   :  { %v173_v48 = vpop.xlane.xlu1 %172 }
 0x3e5   :  { %v197_v53 = vpop.xlane.xlu1 %196 }
 0x3ed   :  { %v209_v57 = vpop.xlane.xlu1 %208 }
 0x433   :  { %v162_v40 = vpop.xlane.xlu0 %161 }
 0x434   :  { %v246_v41 = vsel %vm222_vm7, %v245_v39, %v162_v40 }
 0x435   :  { %v247_v49 = vsel %vm224_vm8, %v246_v41, %v167_v25 }
 0x436   :  { %v248_v51 = vsel %vm226_vm9, %v247_v49, %v173_v48 }
 0x437   :  { %v175_v42 = vpop.permute.xlu0 %174 }
 0x438   :  { %v177_v43 = vsel %vm23_vm0, %v175_v42, 0.0  ;;  %vm259_vm0 = vcmask 130048  }
 0x439   :  { %178 = vadd.xlane.f32.xlu0 %v177_v43 }
 0x43d   :  { %184 = vadd.xlane.f32.xlu0 %v183_v44 }
 0x441   :  { %190 = vadd.xlane.f32.xlu0 %v189_v45 }
 0x445   :  { %202 = vadd.xlane.f32.xlu0 %v201_v46 }
 0x4c6   :  { %v179_v47 = vpop.xlane.xlu0 %178 }
 0x4c7   :  { %v249_v52 = vsel %vm228_vm10, %v248_v51, %v179_v47 }
 0x4ca   :  { %v185_v50 = vpop.xlane.xlu0 %184 }
 0x4cb   :  { %v250_v54 = vsel %vm230_vm11, %v249_v52, %v185_v50 }
 0x4ce   :  { %v191_v55 = vpop.xlane.xlu0 %190 }
 0x4cf   :  { %v251_v56 = vsel %vm232_vm12, %v250_v54, %v191_v55 }
 0x4d0   :  { %v252_v58 = vsel %vm234_vm13, %v251_v56, %v197_v53 }
 0x4d2   :  { %v203_v59 = vpop.xlane.xlu0 %202 }
 0x4d3   :  { %v253_v60 = vsel %vm236_vm14, %v252_v58, %v203_v59 }
 0x4d4   :  { %v254_v61 = vsel %vm238_vm15, %v253_v60, %v209_v57 }
 0x4d5   :  { %256 = vrot.lane.b32.xlu0 %v254_v61, %s341_s20 }
 0x547   :  { %v257_v62 = vpop.permute.xlu0 %256 }
 0x548   :  { %v260_v63 = vsel %vm259_vm0, %v425_v3, %v257_v62 }
 0x549   :  { %v261_v0 = vmul.f32 0.0625, %v260_v63 }
 0x54b   :  { %263 = vst.msk [vmem:[#allocation5] sm:$0xf] %vm262_vm1, %v261_v0 }
 0x54c   :  { %323 = shalt.err (!%p320_p12)
}
 0x54d   :  { %s324_s29 = scalar_lea.hbm %s488_s1, 64 }
 0x54e   :  { %p325_p13 = scmp.ne.s32.totalorder %s488_s1, %s324_s29  ;;  %p328_p0 = scmp.lt.u32.totalorder %s324_s29, %s488_s1 }
 0x550   :  { %p330_p1 = pnand %p328_p0, %p325_p13 }
 0x552   :  { %333 = shalt.err (!%p330_p1)
}
 0x553   :  { %273 = dma.vmem_to_hbm [thread:$0]  %s271_s25, 64, %s488_s1, [#allocation4]  }
 0x554   :  { %336 = dma.done.wait [#allocation4], 64  }
 0x555   :  { %337 = vsyncadd [#allocation4], 4294967232 }
 0x556   :  { %277 = vsyncpa [#allocation3], 1 }
 0x557   :  { %278 = vsyncpa [#allocation4], 1 }

</bundles_post_ra>
